<compile_context>
chip_gen: v7x
topology: tpu7x:2x2x1
jax: 0.10.0
libtpu: 0.0.40
codegen_flags: <defaults>
</compile_context>

<pallas_src>
import functools

import jax
import jax.numpy as jnp
from jax.experimental import pallas as pl
from jax.experimental.pallas import tpu as pltpu


def _sublane_multiple(dtype) -> int:
    # 8 for 4-byte, 16 for 2-byte, 32 for 1-byte dtypes.
    return max(8, 32 // jnp.dtype(dtype).itemsize)


def _copy_kernel(x_ref, o_ref):
    # Pure lane-dense copy: just vld/vst, no relayout.
    o_ref[...] = x_ref[...]


def _pallas_copy_2d(x):
    """Identity copy of a 2-D array through Pallas, tiled along rows."""
    R, C = x.shape
    sub = _sublane_multiple(x.dtype)
    itemsize = jnp.dtype(x.dtype).itemsize
    bytes_per_row = C * itemsize

    # Target ~8 MiB blocks: in+out, double-buffered ~= 4x block ~= 32 MiB VMEM.
    target_block_bytes = 8 * 1024 * 1024
    rows_budget = max(sub, (target_block_bytes // max(bytes_per_row, 1)) // sub * sub)
    # TODO(synk): if a single row ever exceeds the block budget and C is not a
    # multiple of 128, a second (column) grid axis would be needed; gridworld
    # observation sizes never hit this.

    if R <= rows_budget:
        # One block covering the whole array (block == full dims, exempt from
        # the (8,128) divisibility rule).
        TR = R
        grid = (1,)
    else:
        TR = rows_budget
        grid = (pl.cdiv(R, TR),)  # ragged last tile -> masked writes, no padding

    block_bytes = TR * bytes_per_row
    # Actual footprint (+ slack), capped well under v7x's 64 MiB physical VMEM.
    vmem_limit = min(max(4 * block_bytes + (2 << 20), 32 << 20), 48 << 20)

    return pl.pallas_call(
        _copy_kernel,
        out_shape=jax.ShapeDtypeStruct((R, C), x.dtype),
        grid=grid,
        in_specs=[pl.BlockSpec((TR, C), lambda i: (i, 0))],
        out_specs=pl.BlockSpec((TR, C), lambda i: (i, 0)),
        input_output_aliases={0: 0},
        compiler_params=pltpu.CompilerParams(
            dimension_semantics=("parallel",),
            vmem_limit_bytes=vmem_limit,
        ),
    )(x)


def gridworld_env_model_forward(obs, *, use_pallas: bool = True):
    """Flatten obs (B, W, H) -> (B, W*H), matching GridworldEnvModel.forward."""
    B, W, H = obs.shape
    E = W * H

    # Free metadata flatten (row-major), exactly torch's x.reshape(B, -1).
    x = obs.reshape(B, E)

    if not use_pallas:
        # Fast path (recommended): the module is a pure reshape; skip the
        # kernel's HBM read+write entirely.
        return x

    # Shape-agnostic copy: view the contiguous data as a wide lane-dense slab
    # so tiles are wide regardless of W*H.  The reshape is metadata-only.
    N = B * E
    slab_w = 0
    for cand in (4096, 2048, 1024, 512, 256, 128):
        if N % cand == 0:
            slab_w = cand
            break

    if slab_w:
        y = _pallas_copy_2d(x.reshape(N // slab_w, slab_w))
        return y.reshape(B, E)

    # Fallback: W*H incompatible with a 128-wide slab view.  Tile (B, E)
    # directly; the full-extent last dim is exempt from the 128 rule.
    return _pallas_copy_2d(x)


if __name__ == "__main__":
    # Shapes consistent with the module: obs_space = (W, H) = (16, 16),
    # batch = 2 -> obs (2, 16, 16), embedding (2, 256).
    key = jax.random.PRNGKey(0)
    B, W, H = 2, 16, 16
    obs = jax.random.normal(key, (B, W, H), dtype=jnp.float32)

    # Reference flatten (computed before donating obs to the kernel path).
    ref = jax.block_until_ready(obs.reshape(B, -1))

    # Pallas path, with the input donated so input_output_aliases can reuse
    # the HBM buffer for the identity copy.
    fwd = jax.jit(
        functools.partial(gridworld_env_model_forward, use_pallas=True),
        donate_argnums=(0,),
    )
    out = jax.block_until_ready(fwd(obs))

    assert out.shape == (B, W * H), out.shape
    assert jnp.array_equal(out, ref), "mismatch vs reference flatten (pallas path)"

    # Fast path (production): pure metadata reshape, no kernel launch.
    obs2 = jax.random.normal(jax.random.PRNGKey(0), (B, W, H), dtype=jnp.float32)
    out_fast = jax.block_until_ready(
        gridworld_env_model_forward(obs2, use_pallas=False)
    )
    assert jnp.array_equal(out_fast, ref), "mismatch vs reference flatten (fast path)"

    print("KERNEL_OK")
</pallas_src>

<mosaic_0001>
module attributes {stable_mosaic.version = 11 : i64} {
  func.func @_copy_kernel(%arg0: i32, %arg1: memref<1x512xf32, #tpu.memory_space<vmem>>, %arg2: memref<1x512xf32, #tpu.memory_space<vmem>>) attributes {dimension_semantics = [#tpu.dimension_semantics<parallel>], iteration_bounds = array<i64: 1>, scalar_prefetch = 0 : i64, scratch_operands = 0 : i64, tpu.core_type = #tpu.core_type<tc>, window_params = [{transform_indices = @transform_0, window_bounds = array<i64: 1, 512>}, {transform_indices = @transform_1, window_bounds = array<i64: 1, 512>}]} {
    %c0 = arith.constant 0 : index
    %c0_0 = arith.constant 0 : index
    %0 = vector.load %arg1[%c0, %c0_0] : memref<1x512xf32, #tpu.memory_space<vmem>>, vector<1x512xf32>
    %c0_1 = arith.constant 0 : index
    %c0_2 = arith.constant 0 : index
    %1 = vector.load %arg2[%c0_1, %c0_2] : memref<1x512xf32, #tpu.memory_space<vmem>>, vector<1x512xf32>
    tpu.vector_store %arg2[%c0_1, %c0_2], %0 {strides = array<i32>} : memref<1x512xf32, #tpu.memory_space<vmem>>, vector<1x512xf32>,
    return
  }
  func.func @transform_0(%arg0: i32) -> (i32, i32) {
    %c0_i32 = arith.constant 0 : i32
    %c0_i32_0 = arith.constant 0 : i32
    return %arg0, %c0_i32 : i32, i32
  }
  func.func @transform_1(%arg0: i32) -> (i32, i32) {
    %c0_i32 = arith.constant 0 : i32
    %c0_i32_0 = arith.constant 0 : i32
    return %arg0, %c0_i32 : i32, i32
  }
}

</mosaic_0001>

<bundles_post_ra>
// kernel: gridworld_env_model_forward.1
= control target key start
LH: loop header
LB: loop body
LE: loop exit
PB: predicated region body
PF: predicated region fallthrough
CT: control target
= control target key end

     0   :  { %v9_v0 = vlaneseq  ;;  %s34_s0 = inlined_call_operand.vmem [shape: f32[1,512], index: 0, kind: input, shape index: {}, may-alias: {0,1}]   ;;  %s35_s1 = inlined_call_operand.vmem [shape: f32[1,512], index: 1, kind: output, shape index: {}, may-alias: {0,1}]  }
   0x1   :  { %v8_v1 = vld [vmem:[%s34_s0] sm:$0xf] }
   0x2   :  { %vm11_vm0 = vcmp.lt.s32.totalorder %v9_v0, 512 }
   0x3   :  { %13 = vst.msk [vmem:[%s35_s1] sm:$0xf] %vm11_vm0, %v8_v1 }

</bundles_post_ra>
